<compile_context>
chip_gen: v5e
topology: v5e:2x2
jax: 0.10.0
libtpu: 0.0.40
codegen_flags: <defaults>
</compile_context>

<pallas_src>
import numpy as np
import jax
import jax.numpy as jnp
from jax.experimental import pallas as pl
from jax.experimental.pallas import tpu as pltpu

STATE_SIZE = 33
ACTION_SIZE = 2
FC1 = 256
FC2 = 128


def _cdiv(a, b):
    return (a + b - 1) // b


def _round_up(x, m):
    return ((x + m - 1) // m) * m


def critic_kernel(s_ref, a_ref, w1_ref, b1_ref, w2s_ref, w2a_ref, b2_ref,
                  w3_ref, b3_ref, o_ref):
    # Streamed batch tiles.
    s_bf = s_ref[...].astype(jnp.bfloat16)                       # (tb, 33) bf16
    a = a_ref[...]                                               # (tb, 2)  f32

    # fc1 + relu: MXU dot with bf16 operands, f32 accumulation.
    h1 = jnp.dot(s_bf, w1_ref[...],
                 preferred_element_type=jnp.float32) + b1_ref[...]
    h1 = jnp.maximum(h1, 0.0)                                    # (tb, 256) f32

    # fc2 over concat([h1, action]):
    #   state part  -> MXU (bf16 operands, f32 accum)
    #   action part -> VPU rank-2 broadcast update (2 nonzero K rows only)
    h2 = jnp.dot(h1.astype(jnp.bfloat16), w2s_ref[...],
                 preferred_element_type=jnp.float32)             # (tb, 128) f32
    h2 = (h2
          + a[:, 0:1] * w2a_ref[0:1, :]
          + a[:, 1:2] * w2a_ref[1:2, :]
          + b2_ref[...])
    h2 = jnp.maximum(h2, 0.0)                                    # (tb, 128) f32

    # fc3 (N=1): VPU multiply + XLU lane reduce, keeps the MXU free.
    o_ref[...] = jnp.sum(h2 * w3_ref[...], axis=-1, keepdims=True) + b3_ref[...]


def critic_forward(state, action, kernel_params, *, tile_batch=2048):
    """state: (B, 33) f32, action: (B, 2) f32 -> (B, 1) f32 Q-values."""
    B = state.shape[0]
    w1t, b1, w2s, w2a, b2, w3row, b3 = kernel_params

    state = state.astype(jnp.float32)
    action = action.astype(jnp.float32)

    # Cap the tile so the "parallel" grid has >= 2 steps when B allows
    # (feeds both v7x TensorCores) and intermediates stay small.
    tb = min(tile_batch, _round_up(_cdiv(B, 2), 8))
    b_pad = _round_up(B, tb)
    if b_pad != B:
        pad = b_pad - B
        state = jnp.pad(state, ((0, pad), (0, 0)))
        action = jnp.pad(action, ((0, pad), (0, 0)))
    grid = (b_pad // tb,)

    mxu_flops_per_row = 2 * (STATE_SIZE * FC1 + FC1 * FC2)
    vpu_flops_per_row = 2 * (ACTION_SIZE * FC2 + FC2)
    param_bytes = (2 * (STATE_SIZE * FC1 + FC1 * FC2)            # bf16 weights
                   + 4 * (FC1 + ACTION_SIZE * FC2 + FC2 + FC2 + 1))
    cost = pl.CostEstimate(
        flops=int(b_pad * (mxu_flops_per_row + vpu_flops_per_row)),
        transcendentals=0,
        bytes_accessed=int(b_pad * (STATE_SIZE + ACTION_SIZE + 1) * 4
                           + param_bytes),
    )

    out = pl.pallas_call(
        critic_kernel,
        out_shape=jax.ShapeDtypeStruct((b_pad, 1), jnp.float32),
        grid=grid,
        in_specs=[
            pl.BlockSpec((tb, STATE_SIZE), lambda i: (i, 0)),    # state (streamed)
            pl.BlockSpec((tb, ACTION_SIZE), lambda i: (i, 0)),   # action (streamed)
            pl.BlockSpec((STATE_SIZE, FC1), lambda i: (0, 0)),   # w1^T  bf16 (resident)
            pl.BlockSpec((1, FC1), lambda i: (0, 0)),            # b1    f32
            pl.BlockSpec((FC1, FC2), lambda i: (0, 0)),          # w2 state part bf16
            pl.BlockSpec((ACTION_SIZE, FC2), lambda i: (0, 0)),  # w2 action rows f32
            pl.BlockSpec((1, FC2), lambda i: (0, 0)),            # b2    f32
            pl.BlockSpec((1, FC2), lambda i: (0, 0)),            # w3 row f32
            pl.BlockSpec((1, 1), lambda i: (0, 0)),              # b3    f32
        ],
        out_specs=pl.BlockSpec((tb, 1), lambda i: (i, 0)),
        compiler_params=pltpu.CompilerParams(
            dimension_semantics=("parallel",),
            vmem_limit_bytes=24 << 20,
        ),
        cost_estimate=cost,
    )(state, action, w1t, b1, w2s, w2a, b2, w3row, b3)

    return out[:B]


def init_torch_like_params(key):
    """Deterministic init mirroring Critic.reset_parameters bounds (PyTorch layout)."""
    k1, k2, k3, k4, k5, k6 = jax.random.split(key, 6)
    f1 = 1.0 / np.sqrt(FC1)   # fc1.weight.size()[0] == 256
    f2 = 1.0 / np.sqrt(FC2)   # fc2.weight.size()[0] == 128
    f3 = 0.003
    w1 = jax.random.uniform(k1, (FC1, STATE_SIZE), jnp.float32, -f1, f1)
    b1 = jax.random.uniform(k2, (FC1,), jnp.float32, -f1, f1)
    w2 = jax.random.uniform(k3, (FC2, FC1 + ACTION_SIZE), jnp.float32, -f2, f2)
    b2 = jax.random.uniform(k4, (FC2,), jnp.float32, -f2, f2)
    w3 = jax.random.uniform(k5, (1, FC2), jnp.float32, -f3, f3)
    b3 = jax.random.uniform(k6, (1,), jnp.float32, -f3, f3)
    return (w1, b1, w2, b2, w3, b3)


def prepare_kernel_params(torch_params):
    """Transpose / split PyTorch-layout weights for the kernel (one-time prep)."""
    w1, b1, w2, b2, w3, b3 = torch_params
    w1t = w1.T.astype(jnp.bfloat16)                      # (33, 256)  MXU operand
    w2t = w2.T                                           # (258, 128)
    w2_state = w2t[:FC1].astype(jnp.bfloat16)            # (256, 128) MXU operand
    w2_action = w2t[FC1:].astype(jnp.float32)            # (2, 128)   VPU rank-2 rows
    return (
        w1t,
        b1.reshape(1, FC1).astype(jnp.float32),
        w2_state,
        w2_action,
        b2.reshape(1, FC2).astype(jnp.float32),
        w3.reshape(1, FC2).astype(jnp.float32),
        b3.reshape(1, 1).astype(jnp.float32),
    )


def reference_forward(state, action, torch_params):
    """Plain-JAX f32 reference matching the PyTorch forward pass exactly."""
    w1, b1, w2, b2, w3, b3 = torch_params
    h1 = jnp.maximum(state @ w1.T + b1, 0.0)
    x = jnp.concatenate([h1, action], axis=1)
    h2 = jnp.maximum(x @ w2.T + b2, 0.0)
    return h2 @ w3.T + b3


if __name__ == "__main__":
    key = jax.random.PRNGKey(0)
    kp, ks, ka = jax.random.split(key, 3)

    B = 8
    state = jax.random.normal(ks, (B, STATE_SIZE), jnp.float32)
    action = jax.random.normal(ka, (B, ACTION_SIZE), jnp.float32)

    torch_params = init_torch_like_params(kp)
    kernel_params = prepare_kernel_params(torch_params)

    out = critic_forward(state, action, kernel_params)
    out = jax.block_until_ready(out)

    ref = reference_forward(state, action, torch_params)
    # bf16 MXU operands (f32 accumulation) -> tolerance vs the pure-f32 PyTorch
    # reference is loosened (observed error ~1e-4..1e-3 absolute).
    np.testing.assert_allclose(np.asarray(out), np.asarray(ref),
                               rtol=2e-2, atol=2e-2)
    assert out.shape == (B, 1)
    print("KERNEL_OK")
</pallas_src>

<mosaic_0001>
module attributes {stable_mosaic.version = 11 : i64} {
  func.func @critic_kernel(%arg0: i32, %arg1: memref<8x33xf32, #tpu.memory_space<vmem>>, %arg2: memref<8x2xf32, #tpu.memory_space<vmem>>, %arg3: memref<33x256xbf16, #tpu.memory_space<vmem>>, %arg4: memref<1x256xf32, #tpu.memory_space<vmem>>, %arg5: memref<256x128xbf16, #tpu.memory_space<vmem>>, %arg6: memref<2x128xf32, #tpu.memory_space<vmem>>, %arg7: memref<1x128xf32, #tpu.memory_space<vmem>>, %arg8: memref<1x128xf32, #tpu.memory_space<vmem>>, %arg9: memref<1x1xf32, #tpu.memory_space<vmem>>, %arg10: memref<8x1xf32, #tpu.memory_space<vmem>>) attributes {dimension_semantics = [#tpu.dimension_semantics<parallel>], iteration_bounds = array<i64: 1>, scalar_prefetch = 0 : i64, scratch_operands = 0 : i64, tpu.core_type = #tpu.core_type<tc>, window_params = [{transform_indices = @transform_0, window_bounds = array<i64: 8, 33>}, {transform_indices = @transform_1, window_bounds = array<i64: 8, 2>}, {pipeline_mode = #tpu.pipeline_mode<synchronous>, transform_indices = @transform_2, window_bounds = array<i64: 33, 256>}, {pipeline_mode = #tpu.pipeline_mode<synchronous>, transform_indices = @transform_3, window_bounds = array<i64: 1, 256>}, {pipeline_mode = #tpu.pipeline_mode<synchronous>, transform_indices = @transform_4, window_bounds = array<i64: 256, 128>}, {pipeline_mode = #tpu.pipeline_mode<synchronous>, transform_indices = @transform_5, window_bounds = array<i64: 2, 128>}, {pipeline_mode = #tpu.pipeline_mode<synchronous>, transform_indices = @transform_6, window_bounds = array<i64: 1, 128>}, {pipeline_mode = #tpu.pipeline_mode<synchronous>, transform_indices = @transform_7, window_bounds = array<i64: 1, 128>}, {pipeline_mode = #tpu.pipeline_mode<synchronous>, transform_indices = @transform_8, window_bounds = array<i64: 1, 1>}, {transform_indices = @transform_9, window_bounds = array<i64: 8, 1>}]} {
    %c0 = arith.constant 0 : index
    %c0_0 = arith.constant 0 : index
    %0 = vector.load %arg1[%c0, %c0_0] : memref<8x33xf32, #tpu.memory_space<vmem>>, vector<8x33xf32>
    %1 = arith.truncf %0 : vector<8x33xf32> to vector<8x33xbf16>
    %c0_1 = arith.constant 0 : index
    %c0_2 = arith.constant 0 : index
    %2 = vector.load %arg2[%c0_1, %c0_2] : memref<8x2xf32, #tpu.memory_space<vmem>>, vector<8x2xf32>
    %c0_3 = arith.constant 0 : index
    %c0_4 = arith.constant 0 : index
    %3 = vector.load %arg3[%c0_3, %c0_4] : memref<33x256xbf16, #tpu.memory_space<vmem>>, vector<33x256xbf16>
    %cst = arith.constant dense<0.000000e+00> : vector<8x256xf32>
    %4 = tpu.matmul %1, %3, %cst {dimension_numbers = #tpu.dot_dimension_numbers<[1], [0], [0], [1], [0, 0, 1, 1], [], []>} : vector<8x33xbf16>, vector<33x256xbf16>, vector<8x256xf32> -> vector<8x256xf32>
    %c0_5 = arith.constant 0 : index
    %c0_6 = arith.constant 0 : index
    %5 = vector.load %arg4[%c0_5, %c0_6] : memref<1x256xf32, #tpu.memory_space<vmem>>, vector<1x256xf32>
    %6 = vector.broadcast %5 : vector<1x256xf32> to vector<8x256xf32>
    %7 = arith.addf %4, %6 : vector<8x256xf32>
    %cst_7 = arith.constant 0.000000e+00 : f32
    %8 = vector.broadcast %cst_7 : f32 to vector<8x256xf32>
    %9 = arith.maximumf %7, %8 : vector<8x256xf32>
    %10 = arith.truncf %9 : vector<8x256xf32> to vector<8x256xbf16>
    %c0_8 = arith.constant 0 : index
    %c0_9 = arith.constant 0 : index
    %11 = vector.load %arg5[%c0_8, %c0_9] : memref<256x128xbf16, #tpu.memory_space<vmem>>, vector<256x128xbf16>
    %cst_10 = arith.constant dense<0.000000e+00> : vector<8x128xf32>
    %12 = tpu.matmul %10, %11, %cst_10 {dimension_numbers = #tpu.dot_dimension_numbers<[1], [0], [0], [1], [0, 0, 1, 1], [], []>} : vector<8x256xbf16>, vector<256x128xbf16>, vector<8x128xf32> -> vector<8x128xf32>
    %13 = vector.extract_strided_slice %2 {offsets = [0, 0], sizes = [8, 1], strides = [1, 1]} : vector<8x2xf32> to vector<8x1xf32>
    %c0_11 = arith.constant 0 : index
    %c0_12 = arith.constant 0 : index
    %14 = vector.load %arg6[%c0_11, %c0_12] : memref<2x128xf32, #tpu.memory_space<vmem>>, vector<1x128xf32>
    %15 = vector.broadcast %13 : vector<8x1xf32> to vector<8x128xf32>
    %16 = vector.broadcast %14 : vector<1x128xf32> to vector<8x128xf32>
    %17 = arith.mulf %15, %16 : vector<8x128xf32>
    %18 = arith.addf %12, %17 : vector<8x128xf32>
    %19 = vector.extract_strided_slice %2 {offsets = [0, 1], sizes = [8, 1], strides = [1, 1]} : vector<8x2xf32> to vector<8x1xf32>
    %c1 = arith.constant 1 : index
    %c0_13 = arith.constant 0 : index
    %20 = vector.load %arg6[%c1, %c0_13] : memref<2x128xf32, #tpu.memory_space<vmem>>, vector<1x128xf32>
    %21 = vector.broadcast %19 : vector<8x1xf32> to vector<8x128xf32>
    %22 = vector.broadcast %20 : vector<1x128xf32> to vector<8x128xf32>
    %23 = arith.mulf %21, %22 : vector<8x128xf32>
    %24 = arith.addf %18, %23 : vector<8x128xf32>
    %c0_14 = arith.constant 0 : index
    %c0_15 = arith.constant 0 : index
    %25 = vector.load %arg7[%c0_14, %c0_15] : memref<1x128xf32, #tpu.memory_space<vmem>>, vector<1x128xf32>
    %26 = vector.broadcast %25 : vector<1x128xf32> to vector<8x128xf32>
    %27 = arith.addf %24, %26 : vector<8x128xf32>
    %cst_16 = arith.constant 0.000000e+00 : f32
    %28 = vector.broadcast %cst_16 : f32 to vector<8x128xf32>
    %29 = arith.maximumf %27, %28 : vector<8x128xf32>
    %c0_17 = arith.constant 0 : index
    %c0_18 = arith.constant 0 : index
    %30 = vector.load %arg8[%c0_17, %c0_18] : memref<1x128xf32, #tpu.memory_space<vmem>>, vector<1x128xf32>
    %31 = vector.broadcast %30 : vector<1x128xf32> to vector<8x128xf32>
    %32 = arith.mulf %29, %31 : vector<8x128xf32>
    %cst_19 = arith.constant dense<0.000000e+00> : vector<8xf32>
    %33 = vector.multi_reduction <add>, %32, %cst_19 [1] : vector<8x128xf32> to vector<8xf32>
    %34 = vector.shape_cast %33 : vector<8xf32> to vector<8x1xf32>
    %c0_20 = arith.constant 0 : index
    %c0_21 = arith.constant 0 : index
    %35 = vector.load %arg9[%c0_20, %c0_21] : memref<1x1xf32, #tpu.memory_space<vmem>>, vector<1x1xf32>
    %36 = vector.broadcast %35 : vector<1x1xf32> to vector<8x1xf32>
    %37 = arith.addf %34, %36 : vector<8x1xf32>
    %c0_22 = arith.constant 0 : index
    %c0_23 = arith.constant 0 : index
    %38 = vector.load %arg10[%c0_22, %c0_23] : memref<8x1xf32, #tpu.memory_space<vmem>>, vector<8x1xf32>
    tpu.vector_store %arg10[%c0_22, %c0_23], %37 {strides = array<i32>} : memref<8x1xf32, #tpu.memory_space<vmem>>, vector<8x1xf32>,
    return
  }
  func.func @transform_0(%arg0: i32) -> (i32, i32) {
    %c0_i32 = arith.constant 0 : i32
    %c0_i32_0 = arith.constant 0 : i32
    return %arg0, %c0_i32 : i32, i32
  }
  func.func @transform_1(%arg0: i32) -> (i32, i32) {
    %c0_i32 = arith.constant 0 : i32
    %c0_i32_0 = arith.constant 0 : i32
    return %arg0, %c0_i32 : i32, i32
  }
  func.func @transform_2(%arg0: i32) -> (i32, i32) {
    %c0_i32 = arith.constant 0 : i32
    %c0_i32_0 = arith.constant 0 : i32
    %c0_i32_1 = arith.constant 0 : i32
    return %c0_i32, %c0_i32_0 : i32, i32
  }
  func.func @transform_3(%arg0: i32) -> (i32, i32) {
    %c0_i32 = arith.constant 0 : i32
    %c0_i32_0 = arith.constant 0 : i32
    %c0_i32_1 = arith.constant 0 : i32
    return %c0_i32, %c0_i32_0 : i32, i32
  }
  func.func @transform_4(%arg0: i32) -> (i32, i32) {
    %c0_i32 = arith.constant 0 : i32
    %c0_i32_0 = arith.constant 0 : i32
    %c0_i32_1 = arith.constant 0 : i32
    return %c0_i32, %c0_i32_0 : i32, i32
  }
  func.func @transform_5(%arg0: i32) -> (i32, i32) {
    %c0_i32 = arith.constant 0 : i32
    %c0_i32_0 = arith.constant 0 : i32
    %c0_i32_1 = arith.constant 0 : i32
    return %c0_i32, %c0_i32_0 : i32, i32
  }
  func.func @transform_6(%arg0: i32) -> (i32, i32) {
    %c0_i32 = arith.constant 0 : i32
    %c0_i32_0 = arith.constant 0 : i32
    %c0_i32_1 = arith.constant 0 : i32
    return %c0_i32, %c0_i32_0 : i32, i32
  }
  func.func @transform_7(%arg0: i32) -> (i32, i32) {
    %c0_i32 = arith.constant 0 : i32
    %c0_i32_0 = arith.constant 0 : i32
    %c0_i32_1 = arith.constant 0 : i32
    return %c0_i32, %c0_i32_0 : i32, i32
  }
  func.func @transform_8(%arg0: i32) -> (i32, i32) {
    %c0_i32 = arith.constant 0 : i32
    %c0_i32_0 = arith.constant 0 : i32
    %c0_i32_1 = arith.constant 0 : i32
    return %c0_i32, %c0_i32_0 : i32, i32
  }
  func.func @transform_9(%arg0: i32) -> (i32, i32) {
    %c0_i32 = arith.constant 0 : i32
    %c0_i32_0 = arith.constant 0 : i32
    return %arg0, %c0_i32 : i32, i32
  }
}

</mosaic_0001>

<bundles_post_ra>
// kernel: tpu_custom_call.1
= control target key start
LH: loop header
LB: loop body
LE: loop exit
PB: predicated region body
PF: predicated region fallthrough
CT: control target
= control target key end

     0   :  { %s605_s0 = inlined_call_operand.vmem [shape: f32[8,33], index: 0, kind: input, shape index: {}]   ;;  %s606_s1 = inlined_call_operand.vmem [shape: f32[8,2], index: 1, kind: input, shape index: {}]   ;;  %s607_s2 = inlined_call_operand.hbm [shape: bf16[33,256], index: 2, kind: input, shape index: {}]   ;;  %s608_s3 = inlined_call_operand.vmem [shape: f32[1,256], index: 3, kind: input, shape index: {}]   ;;  %s609_s4 = inlined_call_operand.hbm [shape: bf16[256,128], index: 4, kind: input, shape index: {}]   ;;  %s610_s5 = inlined_call_operand.vmem [shape: f32[2,128], index: 5, kind: input, shape index: {}]   ;;  %s611_s6 = inlined_call_operand.vmem [shape: f32[1,128], index: 6, kind: input, shape index: {}]   ;;  %s612_s7 = inlined_call_operand.vmem [shape: f32[1,128], index: 7, kind: input, shape index: {}]   ;;  %s613_s8 = inlined_call_operand.<no memory space> [shape: f32[1,1], index: 8, kind: input, shape index: {}]   ;;  %s614_s9 = inlined_call_operand.vmem [shape: f32[8,1], index: 9, kind: output, shape index: {}]  }
   0x1   :  { %v14_v0 = vstv %s613_s8 }
   0x2   :  { %15 = vst [vmem:[#allocation2] sm:$0x1] %v14_v0 }
   0x3   :  { %16 = vsyncpa [#allocation4], 0  ;;  %s26_s13 = sshll.u32 %s607_s2, 4  ;;  %s27_s13 = int_to_ptr.hbm [resolvable:$true] %s26_s13 }
   0x4   :  { %17 = vsyncpa [#allocation6], 0  ;;  %s514_s14 = smov [#allocation3]   ;;  %s41_s18 = sshll.u32 %s609_s4, 4  ;;  %s42_s18 = int_to_ptr.hbm [resolvable:$true] %s41_s18 }
   0x5   :  { %s28_s15 = sshll.u32 %s514_s14, 4  ;;  %s515_s19 = smov 128   ;;  %s29_s15 = int_to_ptr.vmem [resolvable:$true] %s28_s15 }
   0x6   :  { %s516_s20 = smov 8   ;;  %s517_s8 = smov [#allocation5]  }
   0x7   :  { %34 = dma.hbm_to_vmem [thread:$0]  %s27_s13, 640, %s29_s15, [#allocation4], %s515_s19, %s515_s19, %s516_s20  }
   0x8   :  { %s43_s21 = sshll.u32 %s517_s8, 4  ;;  %s518_s22 = smov 64   ;;  %s44_s21 = int_to_ptr.vmem [resolvable:$true] %s43_s21 }
   0x9   :  { %s519_s23 = smov 4  }
   0xa   :  { %49 = dma.hbm_to_vmem [thread:$0]  %s42_s18, 2048, %s44_s21, [#allocation6], %s518_s22, %s518_s22, %s519_s23  }
   0xb   :  { %510 = dma.done.wait [#allocation4], 640  }
   0xc   :  { %511 = vsyncadd [#allocation4], 4294966656 }
   0xd   :  { %512 = dma.done.wait [#allocation6], 2048  }
   0xe   :  { %513 = vsyncadd [#allocation6], 4294965248  ;;  %v520_v1 = vmov 0   ;;  %vm110_vm0 = vcmask 1040384   ;;  %v74_v2 = vld [vmem:[#allocation3 + $0x20] sm:$0x11] }
   0xf   :  { %455 = vset.pattern.permute.xlu0 %v520_v1  ;;  %v94_v3 = vunpack.c.l.b16 %v74_v2  ;;  %v95_v4 = vunpack.c.h.b16 %v74_v2  ;;  %v112_v5 = vsel %vm110_vm0, 65535, %v520_v1  ;;  %v355_v8 = vld [vmem:[#allocation3 + $0x10] sm:$0xf]  ;;  %v438_v9 = vld [vmem:[#allocation5 + $0x38] sm:$0xff]  ;;  %v430_v11 = vld [vmem:[#allocation3 + $0x14] sm:$0xf0] }
  0x10   :  { %v446_v10 = vld [vmem:[#allocation5 + $0x78] sm:$0xff]  ;;  %v429_v12 = vld [vmem:[#allocation3 + $0x14] sm:$0xf]  ;;  %v357_v13 = vld [vmem:[#allocation3 + $0x18] sm:$0xf0]  ;;  %285 = vmatpush.bf16.msra.mxu2 %v438_v9  ;;  %v356_v20 = vor.u32 %v430_v11, %v355_v8  ;;  %vm106_vm1 = vcmask 269312  }
  0x11   :  { %v100_v6 = vpack.c.b16 %v94_v3, %v94_v3  ;;  %v101_v7 = vpack.c.b16 %v95_v4, %v95_v4  ;;  %298 = vmatpush.bf16.msra.mxu3 %v446_v10  ;;  %v437_v16 = vld [vmem:[#allocation5 + $0x30] sm:$0xff]  ;;  %v347_v18 = vld [vmem:[#allocation3] sm:$0xf]  ;;  %v428_v19 = vld [vmem:[#allocation3 + $0x4] sm:$0xf0]  ;;  %v360_v21 = vor.u32 %v429_v12, %v357_v13  ;;  %v521_v41 = vmov 1  }
  0x12   :  { %v445_v17 = vld [vmem:[#allocation5 + $0x70] sm:$0xff]  ;;  %v427_v22 = vld [vmem:[#allocation3 + $0x4] sm:$0xf]  ;;  %v349_v23 = vld [vmem:[#allocation3 + $0x8] sm:$0xf0]  ;;  %v348_v26 = vor.u32 %v428_v19, %v347_v18  ;;  %vm337_vm2 = vcmask 7168  }
  0x13   :  { %v114_v14 = vand.u32 %v112_v5, %v100_v6  ;;  %v117_v15 = vand.u32 %v112_v5, %v101_v7  ;;  %v436_v24 = vld [vmem:[#allocation5 + $0x28] sm:$0xff]  ;;  %v352_v27 = vor.u32 %v427_v22, %v349_v23  ;;  %v67_v28 = vld [vmem:[%s605_s0] sm:$0xff]  ;;  %v435_v29 = vld [vmem:[#allocation5 + $0x20] sm:$0xff] }
  0x14   :  { %286 = vmatpush.bf16.msra.mxu2 %v437_v16  ;;  %v444_v25 = vld [vmem:[#allocation5 + $0x68] sm:$0xff]  ;;  %v443_v30 = vld [vmem:[#allocation5 + $0x60] sm:$0xff]  ;;  %v68_v31 = vpack.c.bf16 %v67_v28, %v67_v28  ;;  %v434_v32 = vld [vmem:[#allocation5 + $0x18] sm:$0xff] }
  0x15   :  { %124 = vmatpush.bf16.msra.mxu0 %v114_v14  ;;  %137 = vmatpush.bf16.msra.mxu1 %v117_v15  ;;  %v442_v33 = vld [vmem:[#allocation5 + $0x58] sm:$0xff]  ;;  %v433_v34 = vld [vmem:[#allocation5 + $0x10] sm:$0xff]  ;;  %v432_v36 = vld [vmem:[#allocation5 + $0x8] sm:$0xff] }
  0x16   :  { %299 = vmatpush.bf16.msra.mxu3 %v445_v17  ;;  %v441_v35 = vld [vmem:[#allocation5 + $0x50] sm:$0xff]  ;;  %v440_v37 = vld [vmem:[#allocation5 + $0x48] sm:$0xff]  ;;  %v431_v38 = vld [vmem:[#allocation5] sm:$0xff] }
  0x17   :  { %v439_v39 = vld [vmem:[#allocation5 + $0x40] sm:$0xff]  ;;  %v69_v40 = vld [vmem:[%s606_s1] sm:$0xff] }
  0x18   :  { %287 = vmatpush.bf16.msra.mxu2 %v436_v24  ;;  %184 = vperm.xlu0 %455, %v69_v40   ;;  %v75_v42 = vld [vmem:[%s608_s3] sm:$0x3] }
  0x19   :  { %125 = vmatpush.bf16.msra.mxu0 %v356_v20  ;;  %138 = vmatpush.bf16.msra.mxu1 %v360_v21  ;;  %v77_v43 = vperm.slane %v75_v42, 0  ;;  %v78_v44 = vperm.slane %v75_v42, 1  ;;  %v457_v56 = vld [vmem:[%s610_s5] ss:$0 sm:$0xff]  ;;  %v458_v57 = vld [vmem:[%s610_s5 + $0x1] ss:$0 sm:$0xff] }
  0x1a   :  { %300 = vmatpush.bf16.msra.mxu3 %v444_v25  ;;  %v459_v1 = vld [vmem:[%s611_s6] ss:$0 sm:$0xff] }
  0x1b   :  { %v460_v4 = vld [vmem:[%s612_s7] ss:$0 sm:$0xff] }
  0x1c   :  { %288 = vmatpush.bf16.msra.mxu2 %v435_v29  ;;  %v461_v9 = vld [vmem:[#allocation2] ss:$0 sm:$0xff] }
  0x1d   :  { %126 = vmatpush.bf16.msra.mxu0 %v348_v26  ;;  %139 = vmatpush.bf16.msra.mxu1 %v352_v27 }
  0x1e   :  { %301 = vmatpush.bf16.msra.mxu3 %v443_v30 }
  0x20   :  { %361 = vmatmul.msk.bf16.vlgmr.msra.gmra.mxu0 %vm106_vm1, %v68_v31  ;;  %362 = vmatmul.msk.bf16.vlgmr.msra.gmra.mxu1 %vm106_vm1, %v68_v31 }
  0x21   :  { %289 = vmatpush.bf16.msra.mxu2 %v434_v32  ;;  %456 = vset.pattern.permute.xlu0 %v521_v41 }
  0x22   :  { %302 = vmatpush.bf16.msra.mxu3 %v442_v33  ;;  %313 = vperm.xlu0 %456, %v69_v40  }
  0x25   :  { %290 = vmatpush.bf16.msra.mxu2 %v433_v34 }
  0x26   :  { %303 = vmatpush.bf16.msra.mxu3 %v441_v35 }
  0x29   :  { %291 = vmatpush.bf16.msra.mxu2 %v432_v36 }
  0x2a   :  { %304 = vmatpush.bf16.msra.mxu3 %v440_v37 }
  0x2d   :  { %292 = vmatpush.bf16.msra.mxu2 %v431_v38 }
  0x2e   :  { %305 = vmatpush.bf16.msra.mxu3 %v439_v39 }
  0x8a   :  { %v185_v55 = vpop.permute.xlu0 %184 }
  0x8b   :  { %v188_v59 = vmul.f32 %v457_v56, %v185_v55 }
  0x94   :  { %v314_v58 = vpop.permute.xlu0 %313 }
  0x95   :  { %v317_v63 = vmul.f32 %v458_v57, %v314_v58 }
  0x9d   :  { %v128_v45 = vpop.f32.mrf.mxu0  ;;  %v141_v46 = vpop.f32.mrf.mxu1 }
  0x9e   :  { %v129_v47 = vadd.f32 %v128_v45, %v77_v43  ;;  %v142_v48 = vadd.f32 %v141_v46, %v78_v44 }
  0xa0   :  { %v145_v49 = vmax.f32 %v129_v47, 0.0  ;;  %v146_v50 = vmax.f32 %v142_v48, 0.0 }
  0xa2   :  { %v147_v51 = vpack.c.bf16 %v145_v49, %v145_v49  ;;  %v148_v52 = vpack.c.bf16 %v146_v50, %v146_v50 }
  0xa4   :  { %293 = vmatmul.bf16.vlgmr.msra.gmra.mxu2 %v147_v51  ;;  %306 = vmatmul.bf16.vlgmr.msra.gmra.mxu3 %v148_v52 }
  0xa5   :  { %v130_v53 = vpop.f32.mrf.mxu0  ;;  %v143_v54 = vpop.f32.mrf.mxu1 }
 0x127   :  { %v294_v60 = vpop.f32.mrf.mxu2  ;;  %v307_v61 = vpop.f32.mrf.mxu3 }
 0x128   :  { %v295_v62 = vadd.f32 %v294_v60, %v188_v59 }
 0x12a   :  { %v308_v0 = vadd.f32 %v307_v61, %v295_v62 }
 0x12c   :  { %v318_v2 = vadd.f32 %v317_v63, %v308_v0 }
 0x12e   :  { %v323_v3 = vadd.f32 %v459_v1, %v318_v2 }
 0x12f   :  { %v296_v5 = vpop.f32.mrf.mxu2  ;;  %v309_v6 = vpop.f32.mrf.mxu3 }
 0x130   :  { %v324_v7 = vmax.f32 %v323_v3, 0.0 }
 0x132   :  { %v329_v8 = vmul.f32 %v460_v4, %v324_v7 }
 0x134   :  { %330 = vadd.xlane.f32.xlu1 %v329_v8 }
 0x1a7   :  { %v331_v10 = vpop.xlane.xlu1 %330 }
 0x1a8   :  { %v336_v11 = vadd.f32 %v461_v9, %v331_v10 }
 0x1aa   :  { %338 = vst.msk [vmem:[%s614_s9] sm:$0xff] %vm337_vm2, %v336_v11 }
 0x1ab   :  { %343 = vsyncpa [#allocation4], 1 }
 0x1ac   :  { %344 = vsyncpa [#allocation6], 1 }

</bundles_post_ra>
